<compile_context>
chip_gen: v6e
topology: v6e:2x2x1
jax: 0.10.0
libtpu: 0.0.40
codegen_flags: <defaults>
</compile_context>

<pallas_src>
import jax
import jax.numpy as jnp
from jax.experimental import pallas as pl
from jax.experimental.pallas import tpu as pltpu


def _make_one_to_two_kernel(operation: str):
    def kernel(xrow_ref, xcol_ref, o_ref):
        xr = xrow_ref[...]                    # (gb, S)   twod1 source (j axis)
        xc = xcol_ref[...]                    # (gb, Ti)  twod2 source (i axis)
        gb, s = xr.shape
        ti = xc.shape[1]
        row = xr[:, None, :]                  # twod1[g, i, j] = x[g, j]
        col = xc[:, :, None]                  # twod2[g, i, j] = x[g, i]
        if operation == "mean":
            half = jnp.asarray(0.5, dtype=xr.dtype)
            o_ref[...] = ((row + col) * half).astype(o_ref.dtype)
        elif operation == "multiply":
            o_ref[...] = (row * col).astype(o_ref.dtype)
        elif operation == "multiply1":
            # (row + 1) * (col + 1) - 1 == row*col + row + col  (one fewer VPU op)
            o_ref[...] = (row * col + row + col).astype(o_ref.dtype)
        elif operation == "concat":
            # Two static-slice stores; no in-kernel concatenate / relayout.
            o_ref[:, :, :s] = jnp.broadcast_to(row, (gb, ti, s)).astype(o_ref.dtype)
            o_ref[:, :, s:] = jnp.broadcast_to(col, (gb, ti, s)).astype(o_ref.dtype)
        else:
            raise NotImplementedError(operation)

    return kernel


def _select_tiles(bf, s, out_last, itemsize):
    """Pick (gb, ti, vmem_limit_bytes) for the (bf, s, out_last) output.

    gb: rows per step (multiple of the dtype sublane pack, or full bf).
    ti: i-rows of the output plane per step (full s, or a multiple of 128).
    """
    sub = max(8, 32 // max(itemsize, 1))      # sublane multiple for the dtype

    # Per-generation output-block budget: the kernel is HBM-store-bound, so
    # bigger blocks amortize the ~0.35us/step overhead; v7x-class parts have
    # only 64 MiB physical VMEM so stay well below it once double-buffered.
    vmem_cap = 128 << 20
    try:
        info = pltpu.get_tpu_info()
        vmem_cap = int(getattr(info, "vmem_capacity_bytes", vmem_cap))
    except Exception:
        pass
    target = (12 << 20) if vmem_cap <= (64 << 20) else (8 << 20)

    plane = s * out_last * itemsize           # one row's full output plane

    if plane <= target:
        # Row tiling only; whole (s, out_last) plane per row.
        gb = max(1, target // plane)
        if gb >= bf:
            gb = bf
        else:
            gb = max(sub, (gb // sub) * sub)
        ti = s
    else:
        # A single plane exceeds the budget (large seq_len): tile the i axis.
        gb = bf if bf < sub else sub
        row_bytes = gb * out_last * itemsize
        ti = max(1, target // max(row_bytes, 1))
        if ti >= s:
            ti = s
        else:
            ti = min(s, max(128, (ti // 128) * 128))

    # Give the v7x megacore (2 TCs) at least 2 grid steps when possible.
    if pl.cdiv(bf, gb) * pl.cdiv(s, ti) < 2:
        if bf >= 2 * sub:
            gb = max(sub, ((bf // 2) // sub) * sub)
        elif ti == s and s >= 256 and s % 128 == 0:
            ti = max(128, ((s // 2) // 128) * 128)

    # Explicit VMEM budget from the actual double-buffered footprint.
    out_block = gb * ti * out_last * itemsize
    in_block = gb * (s + ti) * itemsize
    vmem_limit = int(max(32 << 20, 2 * (out_block + in_block) + (4 << 20)))
    return gb, ti, vmem_limit


def one_to_two(oned, operation="mean"):
    """oned: (bs, features, seq_len). Returns (bs, features, seq_len, S_out)."""
    operation = operation.lower()
    assert operation in ("concat", "mean", "max", "multiply", "multiply1")
    if operation == "max":
        # TODO(synk): 'max' branch of the PyTorch source is buggy (cat along
        # dim 0 then .max(dim=-1) returns a namedtuple); no faithful translation.
        raise NotImplementedError("'max' operation not supported")

    bs, features, seq_len = oned.shape
    s = seq_len
    out_last = 2 * s if operation == "concat" else s
    bf = bs * features
    x2 = jnp.reshape(oned, (bf, s))           # free row-major reinterpretation

    itemsize = jnp.dtype(oned.dtype).itemsize
    gb, ti, vmem_limit = _select_tiles(bf, s, out_last, itemsize)
    grid = (pl.cdiv(bf, gb), pl.cdiv(s, ti))

    out_elems = bf * s * out_last
    cost = pl.CostEstimate(
        flops=2 * out_elems,
        transcendentals=0,
        bytes_accessed=(2 * bf * s + out_elems) * itemsize,
    )

    y = pl.pallas_call(
        _make_one_to_two_kernel(operation),
        out_shape=jax.ShapeDtypeStruct((bf, s, out_last), oned.dtype),
        grid=grid,
        in_specs=[
            pl.BlockSpec((gb, s), lambda g, t: (g, 0)),    # twod1: full row (j)
            pl.BlockSpec((gb, ti), lambda g, t: (g, t)),   # twod2: i-tile
        ],
        out_specs=pl.BlockSpec((gb, ti, out_last), lambda g, t: (g, t, 0)),
        compiler_params=pltpu.CompilerParams(
            dimension_semantics=("parallel", "parallel"),
            vmem_limit_bytes=vmem_limit,
        ),
        cost_estimate=cost,
    )(x2, x2)

    # Back to (bs, features, seq_len, out_last): free reshape of the HBM result.
    return jnp.reshape(y, (bs, features, s, out_last))


def _reference_one_to_two(oned, operation):
    bs, f, s = oned.shape
    t1 = jnp.broadcast_to(oned[:, :, None, :], (bs, f, s, s))   # [i,j] = oned[j]
    t2 = jnp.broadcast_to(oned[:, :, :, None], (bs, f, s, s))   # [i,j] = oned[i]
    if operation == "concat":
        return jnp.concatenate([t1, t2], axis=-1)
    if operation == "multiply":
        return t1 * t2
    if operation == "multiply1":
        return (t1 + 1) * (t2 + 1) - 1
    return (t1 + t2) / 2                                         # mean


if __name__ == "__main__":
    key = jax.random.PRNGKey(0)
    bs, features, seq_len = 2, 4, 16
    oned = jax.random.normal(key, (bs, features, seq_len), dtype=jnp.float32)

    for op in ("mean", "multiply", "multiply1", "concat"):
        out = one_to_two(oned, operation=op)
        out = jax.block_until_ready(out)
        ref = _reference_one_to_two(oned, op)
        expected_last = 2 * seq_len if op == "concat" else seq_len
        assert out.shape == (bs, features, seq_len, expected_last), (op, out.shape)
        assert out.dtype == oned.dtype
        assert jnp.allclose(out, ref, atol=1e-6), f"mismatch vs reference for {op}"

    # Secondary check: packed dtype (bf16) with a lane-aligned seq_len.
    oned_bf16 = jax.random.normal(
        jax.random.PRNGKey(1), (1, 16, 128), dtype=jnp.float32
    ).astype(jnp.bfloat16)
    out = jax.block_until_ready(one_to_two(oned_bf16, operation="mean"))
    ref = _reference_one_to_two(oned_bf16, "mean")
    assert out.shape == (1, 16, 128, 128) and out.dtype == jnp.bfloat16
    assert jnp.allclose(
        out.astype(jnp.float32), ref.astype(jnp.float32), atol=1e-2
    ), "mismatch vs reference for bf16 mean"

    print("KERNEL_OK")
</pallas_src>

<mosaic_0001>
module attributes {stable_mosaic.version = 11 : i64} {
  func.func @kernel(%arg0: i32, %arg1: i32, %arg2: memref<8x16xf32, #tpu.memory_space<vmem>>, %arg3: memref<8x16xf32, #tpu.memory_space<vmem>>, %arg4: memref<8x16x16xf32, #tpu.memory_space<vmem>>) attributes {dimension_semantics = [#tpu.dimension_semantics<parallel>, #tpu.dimension_semantics<parallel>], iteration_bounds = array<i64: 1, 1>, scalar_prefetch = 0 : i64, scratch_operands = 0 : i64, tpu.core_type = #tpu.core_type<tc>, window_params = [{transform_indices = @transform_0, window_bounds = array<i64: 8, 16>}, {transform_indices = @transform_1, window_bounds = array<i64: 8, 16>}, {transform_indices = @transform_2, window_bounds = array<i64: 8, 16, 16>}]} {
    %c0 = arith.constant 0 : index
    %c0_0 = arith.constant 0 : index
    %0 = vector.load %arg2[%c0, %c0_0] : memref<8x16xf32, #tpu.memory_space<vmem>>, vector<8x16xf32>
    %c0_1 = arith.constant 0 : index
    %c0_2 = arith.constant 0 : index
    %1 = vector.load %arg3[%c0_1, %c0_2] : memref<8x16xf32, #tpu.memory_space<vmem>>, vector<8x16xf32>
    %2 = vector.shape_cast %0 : vector<8x16xf32> to vector<8x1x16xf32>
    %3 = vector.shape_cast %1 : vector<8x16xf32> to vector<8x16x1xf32>
    %4 = vector.broadcast %2 : vector<8x1x16xf32> to vector<8x16x16xf32>
    %5 = vector.broadcast %3 : vector<8x16x1xf32> to vector<8x16x16xf32>
    %6 = arith.addf %4, %5 : vector<8x16x16xf32>
    %cst = arith.constant 5.000000e-01 : f32
    %7 = vector.broadcast %cst : f32 to vector<8x16x16xf32>
    %8 = arith.mulf %6, %7 : vector<8x16x16xf32>
    %c0_3 = arith.constant 0 : index
    %c0_4 = arith.constant 0 : index
    %c0_5 = arith.constant 0 : index
    %9 = vector.load %arg4[%c0_3, %c0_4, %c0_5] : memref<8x16x16xf32, #tpu.memory_space<vmem>>, vector<8x16x16xf32>
    tpu.vector_store %arg4[%c0_3, %c0_4, %c0_5], %8 {strides = array<i32>} : memref<8x16x16xf32, #tpu.memory_space<vmem>>, vector<8x16x16xf32>,
    return
  }
  func.func @transform_0(%arg0: i32, %arg1: i32) -> (i32, i32) {
    %c0_i32 = arith.constant 0 : i32
    %c0_i32_0 = arith.constant 0 : i32
    return %arg0, %c0_i32 : i32, i32
  }
  func.func @transform_1(%arg0: i32, %arg1: i32) -> (i32, i32) {
    %c0_i32 = arith.constant 0 : i32
    return %arg0, %arg1 : i32, i32
  }
  func.func @transform_2(%arg0: i32, %arg1: i32) -> (i32, i32, i32) {
    %c0_i32 = arith.constant 0 : i32
    %c0_i32_0 = arith.constant 0 : i32
    return %arg0, %arg1, %c0_i32 : i32, i32, i32
  }
}

</mosaic_0001>

<bundles_post_ra>
// kernel: tpu_custom_call.1
= control target key start
LH: loop header
LB: loop body
LE: loop exit
PB: predicated region body
PF: predicated region fallthrough
CT: control target
= control target key end

     0   :  { %7 = vsyncpa [#allocation3], 0  ;;  %s417_s0 = inlined_call_operand.hbm [shape: f32[8,16], index: 0, kind: input, shape index: {}]   ;;  %s418_s1 = inlined_call_operand.hbm [shape: f32[8,16], index: 1, kind: input, shape index: {}]   ;;  %s419_s2 = inlined_call_operand.hbm [shape: f32[8,16,16], index: 2, kind: output, shape index: {}]  }
   0x1   :  { %8 = vsyncpa [#allocation6], 0 }
   0x2   :  { %9 = vsyncpa [#allocation4], 0  ;;  %s355_s9 = smov [#allocation2]   ;;  %s356_s11 = smov [#allocation5]  }
   0x3   :  { %s16_s10 = sshll.u32 %s355_s9, 4  ;;  %s26_s12 = sshll.u32 %s356_s11, 4  ;;  %s17_s10 = int_to_ptr.vmem [resolvable:$true] %s16_s10  ;;  %s27_s12 = int_to_ptr.vmem [resolvable:$true] %s26_s12 }
   0x4   :  { %s297_s13 = scalar_lea.vmem %s17_s10, 128  ;;  %p302_p1 = scmp.lt.s32.totalorder %s17_s10, %s17_s10 }
   0x5   :  { %p298_p0 = scmp.ne.s32.totalorder %s17_s10, %s297_s13  ;;  %p303_p2 = scmp.lt.s32.totalorder %s297_s13, %s297_s13 }
   0x7   :  { %p304_p3 = por %p303_p2, %p302_p1 }
   0x9   :  { %p305_p4 = pnand %p304_p3, %p298_p0 }
   0xb   :  { %308 = shalt.err (!%p305_p4)
}
   0xc   :  { %19 = dma.hbm_to_vmem [thread:$0]  %s417_s0, 128, %s17_s10, [#allocation3]  }
   0xd   :  { %s317_s16 = scalar_lea.vmem %s27_s12, 128  ;;  %p322_p6 = scmp.lt.s32.totalorder %s27_s12, %s27_s12 }
   0xe   :  { %p318_p5 = scmp.ne.s32.totalorder %s27_s12, %s317_s16  ;;  %p323_p7 = scmp.lt.s32.totalorder %s317_s16, %s317_s16 }
  0x10   :  { %p324_p8 = por %p323_p7, %p322_p6 }
  0x12   :  { %p325_p9 = pnand %p324_p8, %p318_p5 }
  0x14   :  { %328 = shalt.err (!%p325_p9)
}
  0x15   :  { %29 = dma.hbm_to_vmem [thread:$0]  %s418_s1, 128, %s27_s12, [#allocation6]  }
  0x16   :  { %349 = dma.done.wait [#allocation3], 128  }
  0x17   :  { %350 = vsyncadd [#allocation3], 4294967168 }
  0x18   :  { %351 = dma.done.wait [#allocation6], 128  }
  0x19   :  { %352 = vsyncadd [#allocation6], 4294967168  ;;  %v43_v0 = vlaneseq  ;;  %v357_v1 = vmov 1966171168   ;;  %v37_v8 = vld [vmem:[#allocation5] sm:$0xff]  ;;  %v36_v9 = vld [vmem:[#allocation2] sm:$0xff] }
  0x1a   :  { %v41_v2 = vunpack.c.l.s4 %v357_v1  ;;  %v39_v14 = vcombine.high %v36_v9, %v36_v9  ;;  %vm248_vm0 = vcmask 130048   ;;  %s358_s0 = smov [#allocation7]  }
  0x1b   :  { %v44_v3 = vshrl.u32 %v43_v0, 7  ;;  %s270_s1 = sshll.u32 %s358_s0, 4  ;;  %s271_s1 = int_to_ptr.vmem [resolvable:$true] %s270_s1 }
  0x1c   :  { %v42_v4 = vunpack.c.0.s8 %v41_v2  ;;  %s329_s19 = scalar_lea.vmem %s271_s1, 2048  ;;  %p334_p11 = scmp.lt.s32.totalorder %s271_s1, %s271_s1 }
  0x1d   :  { %v101_v5 = vsub.s32 1, %v44_v3  ;;  %v90_v6 = vsub.s32 0, %v44_v3  ;;  %v112_v12 = vsub.s32 2, %v44_v3  ;;  %v123_v19 = vsub.s32 3, %v44_v3  ;;  %p330_p10 = scmp.ne.s32.totalorder %s271_s1, %s329_s19  ;;  %p335_p12 = scmp.lt.s32.totalorder %s329_s19, %s329_s19 }
  0x1e   :  { %v45_v7 = vsub.s32 %v42_v4, %v44_v3  ;;  %v134_v32 = vsub.s32 4, %v44_v3  ;;  %v145_v38 = vsub.s32 5, %v44_v3  ;;  %v156_v41 = vsub.s32 6, %v44_v3 }
  0x1f   :  { %v102_v10 = vrot.slane %v37_v8, %v101_v5  ;;  %v91_v11 = vrot.slane %v37_v8, %v90_v6  ;;  %v113_v18 = vrot.slane %v37_v8, %v112_v12  ;;  %v124_v31 = vrot.slane %v37_v8, %v123_v19  ;;  %p336_p13 = por %p335_p12, %p334_p11 }
  0x20   :  { %v46_v13 = vrot.slane %v36_v9, %v45_v7  ;;  %v53_v17 = vrot.slane %v39_v14, %v45_v7  ;;  %v135_v37 = vrot.slane %v37_v8, %v134_v32  ;;  %v146_v40 = vrot.slane %v37_v8, %v145_v38 }
  0x21   :  { %104 = vbcast.lane.b32.xlu1 %v102_v10, 256  ;;  %93 = vbcast.lane.b32.xlu0 %v91_v11, 256  ;;  %v157_v42 = vrot.slane %v37_v8, %v156_v41  ;;  %v167_v43 = vsub.s32 7, %v44_v3  ;;  %p337_p0 = pnand %p336_p13, %p330_p10 }
  0x22   :  { %v54_v15 = vcombine.high %v46_v13, %v46_v13  ;;  %v62_v16 = vrot.slane %v46_v13, %v45_v7  ;;  %v69_v23 = vrot.slane %v53_v17, %v45_v7  ;;  %v55_v24 = vcombine.high %v53_v17, %v53_v17 }
  0x23   :  { %v168_v44 = vrot.slane %v37_v8, %v167_v43 }
  0x24   :  { %v76_v20 = vrot.slane %v54_v15, %v45_v7  ;;  %v179_v21 = vrot.slane %v62_v16, %v90_v6  ;;  %v84_v22 = vcombine.high %v62_v16, %v62_v16  ;;  %v382_v28 = vrot.slane %v69_v23, %v90_v6 }
  0x25   :  { %108 = vbcast.lane.b32.xlu1 %v102_v10, 264  ;;  %97 = vbcast.lane.b32.xlu0 %v91_v11, 264  ;;  %v83_v29 = vrot.slane %v55_v24, %v45_v7  ;;  %v85_v30 = vcombine.high %v69_v23, %v69_v23 }
  0x26   :  { %v183_v25 = vrot.slane %v76_v20, %v90_v6  ;;  %v187_v26 = vrot.slane %v84_v22, %v90_v6  ;;  %v86_v27 = vcombine.high %v76_v20, %v76_v20 }
  0x27   :  { %v384_v34 = vrot.slane %v83_v29, %v90_v6  ;;  %v386_v35 = vrot.slane %v85_v30, %v90_v6  ;;  %v87_v36 = vcombine.high %v83_v29, %v83_v29 }
  0x28   :  { %v191_v33 = vrot.slane %v86_v27, %v90_v6 }
  0x29   :  { %119 = vbcast.lane.b32.xlu1 %v113_v18, 264  ;;  %115 = vbcast.lane.b32.xlu0 %v113_v18, 256  ;;  %v388_v39 = vrot.slane %v87_v36, %v90_v6 }
  0x2d   :  { %130 = vbcast.lane.b32.xlu1 %v124_v31, 264  ;;  %126 = vbcast.lane.b32.xlu0 %v124_v31, 256 }
  0x31   :  { %141 = vbcast.lane.b32.xlu1 %v135_v37, 264  ;;  %137 = vbcast.lane.b32.xlu0 %v135_v37, 256 }
  0x35   :  { %152 = vbcast.lane.b32.xlu1 %v146_v40, 264  ;;  %148 = vbcast.lane.b32.xlu0 %v146_v40, 256 }
  0x39   :  { %163 = vbcast.lane.b32.xlu1 %v157_v42, 264  ;;  %159 = vbcast.lane.b32.xlu0 %v157_v42, 256 }
  0x3d   :  { %174 = vbcast.lane.b32.xlu1 %v168_v44, 264  ;;  %170 = vbcast.lane.b32.xlu0 %v168_v44, 256 }
  0x93   :  { %v105_v45 = vpop.permute.xlu1 %104  ;;  %v94_v46 = vpop.permute.xlu0 %93 }
  0x94   :  { %v218_v47 = vadd.f32 %v183_v25, %v105_v45  ;;  %v216_v48 = vadd.f32 %v179_v21, %v94_v46 }
  0x96   :  { %v234_v49 = vmul.f32 0.5, %v218_v47  ;;  %v232_v50 = vmul.f32 0.5, %v216_v48 }
  0x97   :  { %v109_v51 = vpop.permute.xlu1 %108  ;;  %v98_v52 = vpop.permute.xlu0 %97 }
  0x98   :  { %251 = vst.msk [vmem:[#allocation7 + $0x10] sm:$0xff] %vm248_vm0, %v234_v49  ;;  %249 = vst.msk [vmem:[#allocation7] sm:$0xff] %vm248_vm0, %v232_v50  ;;  %v219_v53 = vadd.f32 %v183_v25, %v109_v51  ;;  %v217_v54 = vadd.f32 %v179_v21, %v98_v52 }
  0x9a   :  { %v235_v55 = vmul.f32 0.5, %v219_v53  ;;  %v233_v56 = vmul.f32 0.5, %v217_v54 }
  0x9b   :  { %v120_v57 = vpop.permute.xlu1 %119  ;;  %v116_v58 = vpop.permute.xlu0 %115 }
  0x9c   :  { %252 = vst.msk [vmem:[#allocation7 + $0x18] sm:$0xff] %vm248_vm0, %v235_v55  ;;  %250 = vst.msk [vmem:[#allocation7 + $0x8] sm:$0xff] %vm248_vm0, %v233_v56  ;;  %v221_v59 = vadd.f32 %v187_v26, %v120_v57  ;;  %v220_v60 = vadd.f32 %v187_v26, %v116_v58 }
  0x9e   :  { %v237_v61 = vmul.f32 0.5, %v221_v59  ;;  %v236_v62 = vmul.f32 0.5, %v220_v60 }
  0x9f   :  { %v131_v63 = vpop.permute.xlu1 %130  ;;  %v127_v0 = vpop.permute.xlu0 %126 }
  0xa0   :  { %254 = vst.msk [vmem:[#allocation7 + $0x28] sm:$0xff] %vm248_vm0, %v237_v61  ;;  %253 = vst.msk [vmem:[#allocation7 + $0x20] sm:$0xff] %vm248_vm0, %v236_v62  ;;  %v223_v1 = vadd.f32 %v191_v33, %v131_v63  ;;  %v222_v2 = vadd.f32 %v191_v33, %v127_v0 }
  0xa2   :  { %v239_v3 = vmul.f32 0.5, %v223_v1  ;;  %v238_v4 = vmul.f32 0.5, %v222_v2 }
  0xa3   :  { %v142_v5 = vpop.permute.xlu1 %141  ;;  %v138_v6 = vpop.permute.xlu0 %137 }
  0xa4   :  { %256 = vst.msk [vmem:[#allocation7 + $0x38] sm:$0xff] %vm248_vm0, %v239_v3  ;;  %255 = vst.msk [vmem:[#allocation7 + $0x30] sm:$0xff] %vm248_vm0, %v238_v4  ;;  %v225_v7 = vadd.f32 %v382_v28, %v142_v5  ;;  %v224_v8 = vadd.f32 %v382_v28, %v138_v6 }
  0xa6   :  { %v241_v9 = vmul.f32 0.5, %v225_v7  ;;  %v240_v10 = vmul.f32 0.5, %v224_v8 }
  0xa7   :  { %v153_v11 = vpop.permute.xlu1 %152  ;;  %v149_v12 = vpop.permute.xlu0 %148 }
  0xa8   :  { %258 = vst.msk [vmem:[#allocation7 + $0x48] sm:$0xff] %vm248_vm0, %v241_v9  ;;  %257 = vst.msk [vmem:[#allocation7 + $0x40] sm:$0xff] %vm248_vm0, %v240_v10  ;;  %v227_v13 = vadd.f32 %v384_v34, %v153_v11  ;;  %v226_v14 = vadd.f32 %v384_v34, %v149_v12 }
  0xaa   :  { %v243_v15 = vmul.f32 0.5, %v227_v13  ;;  %v242_v16 = vmul.f32 0.5, %v226_v14 }
  0xab   :  { %v164_v17 = vpop.permute.xlu1 %163  ;;  %v160_v18 = vpop.permute.xlu0 %159 }
  0xac   :  { %260 = vst.msk [vmem:[#allocation7 + $0x58] sm:$0xff] %vm248_vm0, %v243_v15  ;;  %259 = vst.msk [vmem:[#allocation7 + $0x50] sm:$0xff] %vm248_vm0, %v242_v16  ;;  %v229_v19 = vadd.f32 %v386_v35, %v164_v17  ;;  %v228_v20 = vadd.f32 %v386_v35, %v160_v18 }
  0xae   :  { %v245_v21 = vmul.f32 0.5, %v229_v19  ;;  %v244_v22 = vmul.f32 0.5, %v228_v20 }
  0xaf   :  { %v175_v23 = vpop.permute.xlu1 %174  ;;  %v171_v24 = vpop.permute.xlu0 %170 }
  0xb0   :  { %262 = vst.msk [vmem:[#allocation7 + $0x68] sm:$0xff] %vm248_vm0, %v245_v21  ;;  %261 = vst.msk [vmem:[#allocation7 + $0x60] sm:$0xff] %vm248_vm0, %v244_v22  ;;  %v231_v25 = vadd.f32 %v388_v39, %v175_v23  ;;  %v230_v26 = vadd.f32 %v388_v39, %v171_v24 }
  0xb2   :  { %v247_v27 = vmul.f32 0.5, %v231_v25  ;;  %v246_v28 = vmul.f32 0.5, %v230_v26 }
  0xb4   :  { %264 = vst.msk [vmem:[#allocation7 + $0x78] sm:$0xff] %vm248_vm0, %v247_v27  ;;  %263 = vst.msk [vmem:[#allocation7 + $0x70] sm:$0xff] %vm248_vm0, %v246_v28 }
  0xb5   :  { %340 = shalt.err (!%p337_p0)
}
  0xb6   :  { %s359_s20 = smov 128   ;;  %s360_s21 = smov 8  }
  0xb7   :  { %276 = dma.vmem_to_hbm [thread:$0]  %s271_s1, 2048, %s419_s2, [#allocation4], %s359_s20, %s359_s20, %s360_s21  }
  0xb8   :  { %353 = dma.done.wait [#allocation4], 2048  }
  0xb9   :  { %354 = vsyncadd [#allocation4], 4294965248 }
  0xba   :  { %280 = vsyncpa [#allocation3], 1 }
  0xbb   :  { %281 = vsyncpa [#allocation6], 1 }
  0xbc   :  { %282 = vsyncpa [#allocation4], 1 }

</bundles_post_ra>
